<compile_context>
chip_gen: v6e
topology: v6e:2x2x1
jax: 0.10.0
libtpu: 0.0.40
codegen_flags: <defaults>
</compile_context>

<pallas_src>
import jax
import jax.numpy as jnp
from jax import lax
from jax.experimental import pallas as pl
from jax.experimental.pallas import tpu as pltpu

IN_DIM = 10
HID_DIM = 5
OUT_DIM = 2


def fused_affine_kernel(x_ref, wt_ref, bt_ref, ot_ref):
    """One batch tile of y^T = W^T @ x^T + b^T.

    x_ref : (TB, IN_DIM)       input rows for this tile
    wt_ref: (OUT_DIM, IN_DIM)  folded weight, transposed (VMEM-resident)
    bt_ref: (OUT_DIM, 1)       folded bias, transposed
    ot_ref: (OUT_DIM, TB)      lane-dense output tile (batch on the lane axis)
    """
    # Contract the IN_DIM axis of both operands:
    #   (OUT_DIM, IN_DIM) x (TB, IN_DIM)^T -> (OUT_DIM, TB)
    # The result comes out of the MXU already lane-dense, so the store is a
    # full-lane vst instead of a 2-of-128-lane masked write.
    y_t = lax.dot_general(
        wt_ref[...], x_ref[...],
        dimension_numbers=(((1,), (1,)), ((), ())),
        preferred_element_type=jnp.float32)
    ot_ref[...] = (y_t + bt_ref[...]).astype(ot_ref.dtype)


def _pick_batch_tile(batch):
    # >=512-row tiles reach ~85% of the HBM roofline; even the largest tile here
    # (1024 x 10 f32, double-buffered) is far below v7x's 64 MiB VMEM.
    for tb in (1024, 512, 256, 128):
        if batch % tb == 0:
            return tb
    return batch  # tiny / ragged batches: a single block covers everything


def mymodule_forward(x, w1, b1, w2, b2, *, use_bf16=False):
    """y = fc2(fc1(x)); weights stored as (in_features, out_features)."""
    # Algebraic fold (kept in f32):
    #   y = (x @ w1 + b1) @ w2 + b2 = x @ (w1 @ w2) + (b1 @ w2 + b2)
    w = jnp.dot(w1, w2)            # (IN_DIM, OUT_DIM)
    b = jnp.dot(b1, w2) + b2       # (1, OUT_DIM)
    wt = w.T                       # (OUT_DIM, IN_DIM)
    bt = b.T                       # (OUT_DIM, 1), stays f32
    out_dtype = x.dtype

    if use_bf16:
        # Large-B memory-bound path (v6e/v7x): halve x's HBM traffic,
        # still accumulate in f32 and emit f32 output.
        x = x.astype(jnp.bfloat16)
        wt = wt.astype(jnp.bfloat16)

    batch, in_dim = x.shape
    out_dim = wt.shape[0]
    tb = _pick_batch_tile(batch)
    grid = (batch // tb,)

    out_t = pl.pallas_call(
        fused_affine_kernel,
        out_shape=jax.ShapeDtypeStruct((out_dim, batch), out_dtype),
        grid=grid,
        in_specs=[
            pl.BlockSpec((tb, in_dim), lambda i: (i, 0)),         # x tile (pipelined)
            pl.BlockSpec((out_dim, in_dim), lambda i: (0, 0)),    # W^T resident
            pl.BlockSpec((out_dim, 1), lambda i: (0, 0)),         # b^T resident
        ],
        out_specs=pl.BlockSpec((out_dim, tb), lambda i: (0, i)),  # lane-dense output
        compiler_params=pltpu.CompilerParams(
            dimension_semantics=("parallel",)),                   # v7x: shard batch over 2 TCs
    )(x, wt, bt)

    # Present the module's (B, out_dim) layout to callers.
    return out_t.T


def init_params(key):
    # Deterministic init mirroring nn.Linear's uniform(-1/sqrt(fan_in), +).
    k1, k2, k3, k4 = jax.random.split(key, 4)
    lim1 = 1.0 / jnp.sqrt(float(IN_DIM))
    lim2 = 1.0 / jnp.sqrt(float(HID_DIM))
    # Stored as (in_features, out_features) so the math is x @ W + b.
    w1 = jax.random.uniform(k1, (IN_DIM, HID_DIM), jnp.float32, -lim1, lim1)
    b1 = jax.random.uniform(k2, (1, HID_DIM), jnp.float32, -lim1, lim1)
    w2 = jax.random.uniform(k3, (HID_DIM, OUT_DIM), jnp.float32, -lim2, lim2)
    b2 = jax.random.uniform(k4, (1, OUT_DIM), jnp.float32, -lim2, lim2)
    return w1, b1, w2, b2


if __name__ == "__main__":
    key = jax.random.PRNGKey(0)
    kx, kp, kx2 = jax.random.split(key, 3)
    w1, b1, w2, b2 = init_params(kp)

    # Small demo batch consistent with the module (10-feature input rows).
    batch = 8
    x = jax.random.normal(kx, (batch, IN_DIM), jnp.float32)
    out = jax.block_until_ready(mymodule_forward(x, w1, b1, w2, b2))
    ref = (x @ w1 + b1) @ w2 + b2
    assert out.shape == (batch, OUT_DIM)
    assert jnp.allclose(out, ref, atol=1e-5, rtol=1e-5)

    # Larger batch exercises the tiled / double-buffered / multi-block path
    # (TB=1024 -> grid=(2,)) while staying tiny (80 KiB of input).
    batch2 = 2048
    x2 = jax.random.normal(kx2, (batch2, IN_DIM), jnp.float32)
    out2 = jax.block_until_ready(mymodule_forward(x2, w1, b1, w2, b2))
    ref2 = (x2 @ w1 + b1) @ w2 + b2
    assert out2.shape == (batch2, OUT_DIM)
    assert jnp.allclose(out2, ref2, atol=1e-5, rtol=1e-5)

    print("KERNEL_OK")
</pallas_src>

<mosaic_0001>
module attributes {stable_mosaic.version = 11 : i64} {
  func.func @fused_affine_kernel(%arg0: i32, %arg1: memref<8x10xf32, #tpu.memory_space<vmem>>, %arg2: memref<2x10xf32, #tpu.memory_space<vmem>>, %arg3: memref<2x1xf32, #tpu.memory_space<vmem>>, %arg4: memref<2x8xf32, #tpu.memory_space<vmem>>) attributes {dimension_semantics = [#tpu.dimension_semantics<parallel>], iteration_bounds = array<i64: 1>, scalar_prefetch = 0 : i64, scratch_operands = 0 : i64, tpu.core_type = #tpu.core_type<tc>, window_params = [{transform_indices = @transform_0, window_bounds = array<i64: 8, 10>}, {pipeline_mode = #tpu.pipeline_mode<synchronous>, transform_indices = @transform_1, window_bounds = array<i64: 2, 10>}, {pipeline_mode = #tpu.pipeline_mode<synchronous>, transform_indices = @transform_2, window_bounds = array<i64: 2, 1>}, {transform_indices = @transform_3, window_bounds = array<i64: 2, 8>}]} {
    %c0 = arith.constant 0 : index
    %c0_0 = arith.constant 0 : index
    %0 = vector.load %arg2[%c0, %c0_0] : memref<2x10xf32, #tpu.memory_space<vmem>>, vector<2x10xf32>
    %c0_1 = arith.constant 0 : index
    %c0_2 = arith.constant 0 : index
    %1 = vector.load %arg1[%c0_1, %c0_2] : memref<8x10xf32, #tpu.memory_space<vmem>>, vector<8x10xf32>
    %cst = arith.constant dense<0.000000e+00> : vector<2x8xf32>
    %2 = tpu.matmul %0, %1, %cst {dimension_numbers = #tpu.dot_dimension_numbers<[1], [1], [0], [0], [0, 0, 1, 0], [], []>} : vector<2x10xf32>, vector<8x10xf32>, vector<2x8xf32> -> vector<2x8xf32>
    %c0_3 = arith.constant 0 : index
    %c0_4 = arith.constant 0 : index
    %3 = vector.load %arg3[%c0_3, %c0_4] : memref<2x1xf32, #tpu.memory_space<vmem>>, vector<2x1xf32>
    %4 = vector.broadcast %3 : vector<2x1xf32> to vector<2x8xf32>
    %5 = arith.addf %2, %4 : vector<2x8xf32>
    %c0_5 = arith.constant 0 : index
    %c0_6 = arith.constant 0 : index
    %6 = vector.load %arg4[%c0_5, %c0_6] : memref<2x8xf32, #tpu.memory_space<vmem>>, vector<2x8xf32>
    tpu.vector_store %arg4[%c0_5, %c0_6], %5 {strides = array<i32>} : memref<2x8xf32, #tpu.memory_space<vmem>>, vector<2x8xf32>,
    return
  }
  func.func @transform_0(%arg0: i32) -> (i32, i32) {
    %c0_i32 = arith.constant 0 : i32
    %c0_i32_0 = arith.constant 0 : i32
    return %arg0, %c0_i32 : i32, i32
  }
  func.func @transform_1(%arg0: i32) -> (i32, i32) {
    %c0_i32 = arith.constant 0 : i32
    %c0_i32_0 = arith.constant 0 : i32
    %c0_i32_1 = arith.constant 0 : i32
    return %c0_i32, %c0_i32_0 : i32, i32
  }
  func.func @transform_2(%arg0: i32) -> (i32, i32) {
    %c0_i32 = arith.constant 0 : i32
    %c0_i32_0 = arith.constant 0 : i32
    %c0_i32_1 = arith.constant 0 : i32
    return %c0_i32, %c0_i32_0 : i32, i32
  }
  func.func @transform_3(%arg0: i32) -> (i32, i32) {
    %c0_i32 = arith.constant 0 : i32
    %c0_i32_0 = arith.constant 0 : i32
    return %c0_i32, %arg0 : i32, i32
  }
}

</mosaic_0001>

<bundles_post_ra>
// kernel: tpu_custom_call.1
= control target key start
LH: loop header
LB: loop body
LE: loop exit
PB: predicated region body
PF: predicated region fallthrough
CT: control target
= control target key end

     0   :  { %8 = vsyncpa [#allocation3], 0  ;;  %s225_s0 = inlined_call_operand.hbm [shape: f32[8,10], index: 0, kind: input, shape index: {}]   ;;  %s226_s1 = inlined_call_operand.vmem [shape: f32[2,10], index: 1, kind: input, shape index: {}]   ;;  %s227_s2 = inlined_call_operand.vmem [shape: f32[2,1], index: 2, kind: input, shape index: {}]   ;;  %s228_s3 = inlined_call_operand.hbm [shape: f32[2,8], index: 3, kind: output, shape index: {}]  }
   0x1   :  { %9 = vsyncpa [#allocation4], 0  ;;  %s188_s12 = smov [#allocation2]  }
   0x2   :  { %s16_s13 = sshll.u32 %s188_s12, 4  ;;  %s17_s13 = int_to_ptr.vmem [resolvable:$true] %s16_s13 }
   0x3   :  { %s152_s14 = scalar_lea.vmem %s17_s13, 128  ;;  %p157_p1 = scmp.lt.s32.totalorder %s17_s13, %s17_s13 }
   0x4   :  { %p153_p0 = scmp.ne.s32.totalorder %s17_s13, %s152_s14  ;;  %p158_p2 = scmp.lt.s32.totalorder %s152_s14, %s152_s14 }
   0x6   :  { %p159_p3 = por %p158_p2, %p157_p1 }
   0x8   :  { %p160_p4 = pnand %p159_p3, %p153_p0 }
   0xa   :  { %163 = shalt.err (!%p160_p4)
}
   0xb   :  { %19 = dma.hbm_to_vmem [thread:$0]  %s225_s0, 128, %s17_s13, [#allocation3]  }
   0xc   :  { %184 = dma.done.wait [#allocation3], 128  }
   0xd   :  { %185 = vsyncadd [#allocation3], 4294967168  ;;  %v189_v0 = vmov 0.0   ;;  %vm190_vm0 = vmmov 0   ;;  %v191_v1 = vmov 0   ;;  %vm35_vm1 = vcmask 80896  }
   0xe   :  { %133 = vmatprep.subr.mxu0 %v189_v0  ;;  %135 = vmatprep.mubr.msk.f32.mxu0 %vm190_vm0, %v189_v0  ;;  %v28_v2 = vld [vmem:[#allocation2] sm:$0xff]  ;;  %s192_s0 = smov [#allocation5]   ;;  %vm112_vm2 = vcmask 58368  }
   0xf   :  { %143 = vset.pattern.permute.xlu0 %v191_v1  ;;  %v29_v3 = vld [vmem:[%s227_s2] sm:$0x3]  ;;  %134 = vmatpush3.xpose.msk.msra.mxu0 %vm35_vm1, %v28_v2  ;;  %s120_s21 = sshll.u32 %s192_s0, 4  ;;  %s121_s21 = int_to_ptr.vmem [resolvable:$true] %s120_s21 }
  0x10   :  { %v27_v4 = vld [vmem:[%s226_s1] sm:$0x3]  ;;  %32 = vperm.xlu0 %143, %v29_v3   ;;  %s164_s22 = scalar_lea.vmem %s121_s21, 32  ;;  %p169_p6 = scmp.lt.s32.totalorder %s121_s21, %s121_s21 }
  0x11   :  { %p165_p5 = scmp.ne.s32.totalorder %s121_s21, %s164_s22  ;;  %p170_p7 = scmp.lt.s32.totalorder %s164_s22, %s164_s22 }
  0x12   :  { %136 = vmatmul.mubr.msk.f32.vlgmr.msra.gmra.mxu0 %vm35_vm1, %v27_v4 }
  0x13   :  { %p171_p8 = por %p170_p7, %p169_p6 }
  0x15   :  { %p172_p9 = pnand %p171_p8, %p165_p5 }
  0x8b   :  { %v33_v5 = vpop.permute.xlu0 %32 }
  0xd2   :  { %v108_v6 = vpop.f32.mrf.mxu0 }
  0xd3   :  { %v109_v7 = vadd.f32 %v108_v6, %v33_v5 }
  0xd4   :  { %v137_v8 = vpop.f32.mrf.mxu0 }
  0xd5   :  { %113 = vst.msk [vmem:[#allocation5] sm:$0x3] %vm112_vm2, %v109_v7 }
  0xd6   :  { %175 = shalt.err (!%p172_p9)
}
  0xd7   :  { %123 = dma.vmem_to_hbm [thread:$0]  %s121_s21, 32, %s228_s3, [#allocation4]  }
  0xd8   :  { %186 = dma.done.wait [#allocation4], 32  }
  0xd9   :  { %187 = vsyncadd [#allocation4], 4294967264 }
  0xda   :  { %127 = vsyncpa [#allocation3], 1 }
  0xdb   :  { %128 = vsyncpa [#allocation4], 1 }

</bundles_post_ra>
